<compile_context>
chip_gen: v6e
topology: v6e:2x2x1
jax: 0.10.0
libtpu: 0.0.40
codegen_flags: <defaults>
</compile_context>

<pallas_src>
from functools import partial

import jax
import jax.numpy as jnp
from jax.experimental import pallas as pl
from jax.experimental.pallas import tpu as pltpu

HP = 128  # lane-padded hidden width (unmasked, lane-dense stores / vregs)


def rnn_kernel(*refs, B, S, H, with_loss):
    # Ref layout (all f32 unless noted):
    #   idx_ref   : (S*B, 1) int32   token ids, row order = t*B + b
    #   wcomb_ref : (VP, HP)         emb @ W_ih^T + (b_ih + b_hh), zero-padded
    #   whh_ref   : (HP, HP)         W_hh^T, zero-padded beyond H
    #   [y_ref    : (B, HP)          targets, zero-padded beyond H]   (with_loss)
    #   out_ref   : (B, HP)          sigmoid(h_S), lane-dense store
    #   [loss_ref : (1, 1) SMEM      sum of squared errors over real columns]
    if with_loss:
        idx_ref, wcomb_ref, whh_ref, y_ref, out_ref, loss_ref = refs
    else:
        idx_ref, wcomb_ref, whh_ref, out_ref = refs
        y_ref = loss_ref = None

    idx = idx_ref[...]                                   # (S*B, 1)
    wcomb = wcomb_ref[...]                               # (VP, HP)
    whh = whh_ref[...]                                   # (HP, HP)
    VP = wcomb.shape[0]

    # Embedding gather + input projection + bias for ALL timesteps as a single
    # lane-dense MXU matmul (bias is pre-folded into wcomb).
    iota_v = jax.lax.broadcasted_iota(jnp.int32, (1, VP), 1)
    onehot = (idx == iota_v).astype(jnp.float32)         # (S*B, VP)
    x_all = jnp.dot(onehot, wcomb,
                    preferred_element_type=jnp.float32)  # (S*B, HP)

    # Recurrence: h0 == 0, so step 0 is just tanh(x_0) (no matmul). Only S-1
    # dependent (B, HP) x (HP, HP) matmuls + tanh remain on the critical path.
    # Padded columns stay exactly 0 (zero weights / zero bias, tanh(0) = 0).
    h = jnp.tanh(x_all[0:B, :])
    for t in range(1, S):
        x_t = x_all[t * B:(t + 1) * B, :]                # (B, HP)
        h = jnp.tanh(x_t + jnp.dot(h, whh,
                                   preferred_element_type=jnp.float32))

    y_pred = jax.nn.sigmoid(h)                           # (B, HP)
    out_ref[...] = y_pred

    if with_loss:
        # Padded columns hold sigmoid(0) = 0.5 -> mask them out of the loss.
        lane = jax.lax.broadcasted_iota(jnp.int32, (B, HP), 1)
        diff = jnp.where(lane < H, y_pred - y_ref[...], 0.0)
        loss_ref[0, 0] = jnp.sum(diff * diff)


def torch_model_forward(x_idx, emb, w_ih, w_hh, b_ih, b_hh, y=None):
    """Mirrors TorchModel.forward. x_idx: (B, S) int32 token ids."""
    B, S = x_idx.shape
    V, _ = emb.shape
    H = w_hh.shape[0]
    assert H <= HP
    VP = max(128, -(-V // 128) * 128)                    # lane/sublane-aligned vocab

    emb_f = jnp.asarray(emb, jnp.float32)
    w_ih_f = jnp.asarray(w_ih, jnp.float32)
    w_hh_f = jnp.asarray(w_hh, jnp.float32)
    bias = jnp.asarray(b_ih, jnp.float32) + jnp.asarray(b_hh, jnp.float32)

    # Pre-fold embedding table, input projection AND bias (constant-foldable):
    # (V, D) @ (D, H) + b  ->  (V, H), zero-padded to (VP, HP).
    combined = emb_f @ w_ih_f.T + bias[None, :]
    wcomb = jnp.zeros((VP, HP), jnp.float32).at[:V, :H].set(combined)
    whh_p = jnp.zeros((HP, HP), jnp.float32).at[:H, :H].set(w_hh_f.T)

    # Row order t*B + b so per-timestep rows are contiguous inside the kernel.
    idx_tb = x_idx.astype(jnp.int32).T.reshape(S * B, 1)

    vmem = pl.BlockSpec(memory_space=pltpu.MemorySpace.VMEM)
    smem = pl.BlockSpec(memory_space=pltpu.MemorySpace.SMEM)

    if y is None:
        kernel = partial(rnn_kernel, B=B, S=S, H=H, with_loss=False)
        out_padded = pl.pallas_call(
            kernel,
            out_shape=jax.ShapeDtypeStruct((B, HP), jnp.float32),
            in_specs=[vmem, vmem, vmem],
            out_specs=vmem,
        )(idx_tb, wcomb, whh_p)
        return out_padded[:, :H]                         # (B, H)

    # Fused MSE loss: masked squared-error sum in-kernel, mean taken here.
    y_p = jnp.zeros((B, HP), jnp.float32).at[:, :H].set(jnp.asarray(y, jnp.float32))
    kernel = partial(rnn_kernel, B=B, S=S, H=H, with_loss=True)
    _, loss_sum = pl.pallas_call(
        kernel,
        out_shape=(jax.ShapeDtypeStruct((B, HP), jnp.float32),
                   jax.ShapeDtypeStruct((1, 1), jnp.float32)),
        in_specs=[vmem, vmem, vmem, vmem],
        out_specs=(vmem, smem),
    )(idx_tb, wcomb, whh_p, y_p)
    return loss_sum[0, 0] / (B * H)


def _reference_forward(x_idx, emb, w_ih, w_hh, b_ih, b_hh):
    """Pure-JAX reference matching the PyTorch semantics, for verification."""
    x = jnp.take(emb, x_idx, axis=0)                     # (B, S, D)
    B, S, _ = x.shape
    H = w_hh.shape[0]
    h = jnp.zeros((B, H), jnp.float32)
    for t in range(S):
        h = jnp.tanh(x[:, t, :] @ w_ih.T + h @ w_hh.T + b_ih + b_hh)
    return jax.nn.sigmoid(h)


if __name__ == "__main__":
    # Shapes consistent with the module: vocab=30, vector_dim=32,
    # sentence_length=8, batch=2, hidden=6 (fixed by nn.RNN(vector_dim, 6)).
    V, D, S, B, H = 30, 32, 8, 2, 6

    key = jax.random.PRNGKey(0)
    k_emb, k_ih, k_hh, k_bih, k_bhh, k_x, k_y = jax.random.split(key, 7)

    emb = jax.random.normal(k_emb, (V, D), jnp.float32) * 0.1
    w_ih = jax.random.normal(k_ih, (H, D), jnp.float32) * 0.1
    w_hh = jax.random.normal(k_hh, (H, H), jnp.float32) * 0.1
    b_ih = jax.random.normal(k_bih, (H,), jnp.float32) * 0.1
    b_hh = jax.random.normal(k_bhh, (H,), jnp.float32) * 0.1

    x_idx = jax.random.randint(k_x, (B, S), 0, V, jnp.int32)
    y_true = jax.random.uniform(k_y, (B, H), jnp.float32)

    y_pred = torch_model_forward(x_idx, emb, w_ih, w_hh, b_ih, b_hh)
    y_pred = jax.block_until_ready(y_pred)

    loss = torch_model_forward(x_idx, emb, w_ih, w_hh, b_ih, b_hh, y=y_true)
    loss = jax.block_until_ready(loss)

    ref = _reference_forward(x_idx, emb, w_ih, w_hh, b_ih, b_hh)
    ref_loss = jnp.mean((ref - y_true) ** 2)

    assert y_pred.shape == (B, H)
    assert jnp.allclose(y_pred, ref, atol=1e-5, rtol=1e-5), "pred mismatch vs reference"
    assert jnp.allclose(loss, ref_loss, atol=1e-5, rtol=1e-5), "loss mismatch vs reference"
    assert jnp.isfinite(loss)

    print("KERNEL_OK")
</pallas_src>

<mosaic_0001>
module attributes {stable_mosaic.version = 11 : i64} {
  func.func @rnn_kernel(%arg0: memref<16x1xi32, #tpu.memory_space<vmem>>, %arg1: memref<128x128xf32, #tpu.memory_space<vmem>>, %arg2: memref<128x128xf32, #tpu.memory_space<vmem>>, %arg3: memref<2x128xf32, #tpu.memory_space<vmem>>) attributes {dimension_semantics = [], scalar_prefetch = 0 : i64, scratch_operands = 0 : i64, tpu.core_type = #tpu.core_type<tc>} {
    %c0 = arith.constant 0 : index
    %c0_0 = arith.constant 0 : index
    %0 = vector.load %arg0[%c0, %c0_0] : memref<16x1xi32, #tpu.memory_space<vmem>>, vector<16x1xi32>
    %c0_1 = arith.constant 0 : index
    %c0_2 = arith.constant 0 : index
    %1 = vector.load %arg1[%c0_1, %c0_2] : memref<128x128xf32, #tpu.memory_space<vmem>>, vector<128x128xf32>
    %c0_3 = arith.constant 0 : index
    %c0_4 = arith.constant 0 : index
    %2 = vector.load %arg2[%c0_3, %c0_4] : memref<128x128xf32, #tpu.memory_space<vmem>>, vector<128x128xf32>
    %3 = tpu.iota {dimensions = array<i32: 1>} : vector<1x128xi32>
    %4 = vector.broadcast %0 : vector<16x1xi32> to vector<16x128xi32>
    %5 = vector.broadcast %3 : vector<1x128xi32> to vector<16x128xi32>
    %6 = arith.cmpi eq, %4, %5 : vector<16x128xi32>
    %7 = arith.extui %6 : vector<16x128xi1> to vector<16x128xi32>
    %8 = arith.sitofp %7 : vector<16x128xi32> to vector<16x128xf32>
    %cst = arith.constant dense<0.000000e+00> : vector<16x128xf32>
    %9 = tpu.matmul %8, %1, %cst {dimension_numbers = #tpu.dot_dimension_numbers<[1], [0], [0], [1], [0, 0, 1, 1], [], []>} : vector<16x128xf32>, vector<128x128xf32>, vector<16x128xf32> -> vector<16x128xf32>
    %10 = vector.extract_strided_slice %9 {offsets = [0, 0], sizes = [2, 128], strides = [1, 1]} : vector<16x128xf32> to vector<2x128xf32>
    %11 = math.tanh %10 : vector<2x128xf32>
    %12 = vector.extract_strided_slice %9 {offsets = [2, 0], sizes = [2, 128], strides = [1, 1]} : vector<16x128xf32> to vector<2x128xf32>
    %cst_5 = arith.constant dense<0.000000e+00> : vector<2x128xf32>
    %13 = tpu.matmul %11, %2, %cst_5 {dimension_numbers = #tpu.dot_dimension_numbers<[1], [0], [0], [1], [0, 0, 1, 1], [], []>} : vector<2x128xf32>, vector<128x128xf32>, vector<2x128xf32> -> vector<2x128xf32>
    %14 = arith.addf %12, %13 : vector<2x128xf32>
    %15 = math.tanh %14 : vector<2x128xf32>
    %16 = vector.extract_strided_slice %9 {offsets = [4, 0], sizes = [2, 128], strides = [1, 1]} : vector<16x128xf32> to vector<2x128xf32>
    %cst_6 = arith.constant dense<0.000000e+00> : vector<2x128xf32>
    %17 = tpu.matmul %15, %2, %cst_6 {dimension_numbers = #tpu.dot_dimension_numbers<[1], [0], [0], [1], [0, 0, 1, 1], [], []>} : vector<2x128xf32>, vector<128x128xf32>, vector<2x128xf32> -> vector<2x128xf32>
    %18 = arith.addf %16, %17 : vector<2x128xf32>
    %19 = math.tanh %18 : vector<2x128xf32>
    %20 = vector.extract_strided_slice %9 {offsets = [6, 0], sizes = [2, 128], strides = [1, 1]} : vector<16x128xf32> to vector<2x128xf32>
    %cst_7 = arith.constant dense<0.000000e+00> : vector<2x128xf32>
    %21 = tpu.matmul %19, %2, %cst_7 {dimension_numbers = #tpu.dot_dimension_numbers<[1], [0], [0], [1], [0, 0, 1, 1], [], []>} : vector<2x128xf32>, vector<128x128xf32>, vector<2x128xf32> -> vector<2x128xf32>
    %22 = arith.addf %20, %21 : vector<2x128xf32>
    %23 = math.tanh %22 : vector<2x128xf32>
    %24 = vector.extract_strided_slice %9 {offsets = [8, 0], sizes = [2, 128], strides = [1, 1]} : vector<16x128xf32> to vector<2x128xf32>
    %cst_8 = arith.constant dense<0.000000e+00> : vector<2x128xf32>
    %25 = tpu.matmul %23, %2, %cst_8 {dimension_numbers = #tpu.dot_dimension_numbers<[1], [0], [0], [1], [0, 0, 1, 1], [], []>} : vector<2x128xf32>, vector<128x128xf32>, vector<2x128xf32> -> vector<2x128xf32>
    %26 = arith.addf %24, %25 : vector<2x128xf32>
    %27 = math.tanh %26 : vector<2x128xf32>
    %28 = vector.extract_strided_slice %9 {offsets = [10, 0], sizes = [2, 128], strides = [1, 1]} : vector<16x128xf32> to vector<2x128xf32>
    %cst_9 = arith.constant dense<0.000000e+00> : vector<2x128xf32>
    %29 = tpu.matmul %27, %2, %cst_9 {dimension_numbers = #tpu.dot_dimension_numbers<[1], [0], [0], [1], [0, 0, 1, 1], [], []>} : vector<2x128xf32>, vector<128x128xf32>, vector<2x128xf32> -> vector<2x128xf32>
    %30 = arith.addf %28, %29 : vector<2x128xf32>
    %31 = math.tanh %30 : vector<2x128xf32>
    %32 = vector.extract_strided_slice %9 {offsets = [12, 0], sizes = [2, 128], strides = [1, 1]} : vector<16x128xf32> to vector<2x128xf32>
    %cst_10 = arith.constant dense<0.000000e+00> : vector<2x128xf32>
    %33 = tpu.matmul %31, %2, %cst_10 {dimension_numbers = #tpu.dot_dimension_numbers<[1], [0], [0], [1], [0, 0, 1, 1], [], []>} : vector<2x128xf32>, vector<128x128xf32>, vector<2x128xf32> -> vector<2x128xf32>
    %34 = arith.addf %32, %33 : vector<2x128xf32>
    %35 = math.tanh %34 : vector<2x128xf32>
    %36 = vector.extract_strided_slice %9 {offsets = [14, 0], sizes = [2, 128], strides = [1, 1]} : vector<16x128xf32> to vector<2x128xf32>
    %cst_11 = arith.constant dense<0.000000e+00> : vector<2x128xf32>
    %37 = tpu.matmul %35, %2, %cst_11 {dimension_numbers = #tpu.dot_dimension_numbers<[1], [0], [0], [1], [0, 0, 1, 1], [], []>} : vector<2x128xf32>, vector<128x128xf32>, vector<2x128xf32> -> vector<2x128xf32>
    %38 = arith.addf %36, %37 : vector<2x128xf32>
    %39 = math.tanh %38 : vector<2x128xf32>
    %40 = arith.negf %39 : vector<2x128xf32>
    %41 = math.exp %40 : vector<2x128xf32>
    %cst_12 = arith.constant 1.000000e+00 : f32
    %42 = vector.broadcast %cst_12 : f32 to vector<2x128xf32>
    %43 = arith.addf %42, %41 : vector<2x128xf32>
    %44 = arith.divf %42, %43 : vector<2x128xf32>
    %c0_13 = arith.constant 0 : index
    %c0_14 = arith.constant 0 : index
    %45 = vector.load %arg3[%c0_13, %c0_14] : memref<2x128xf32, #tpu.memory_space<vmem>>, vector<2x128xf32>
    tpu.vector_store %arg3[%c0_13, %c0_14], %44 {strides = array<i32>} : memref<2x128xf32, #tpu.memory_space<vmem>>, vector<2x128xf32>,
    return
  }
}

</mosaic_0001>

<bundles_post_ra>
// kernel: tpu_custom_call.1
= control target key start
LH: loop header
LB: loop body
LE: loop exit
PB: predicated region body
PF: predicated region fallthrough
CT: control target
= control target key end

     0   :  { %8 = vsyncpa [#allocation3], 0  ;;  %s1571_s0 = inlined_call_operand.vmem [shape: s32[16,1], index: 0, kind: input, shape index: {}]   ;;  %s1572_s1 = inlined_call_operand.hbm [shape: f32[128,128], index: 1, kind: input, shape index: {}]   ;;  %s1573_s2 = inlined_call_operand.hbm [shape: f32[128,128], index: 2, kind: input, shape index: {}]   ;;  %s1574_s3 = inlined_call_operand.hbm [shape: f32[2,128], index: 3, kind: output, shape index: {}]  }
   0x1   :  { %9 = vsyncpa [#allocation6], 0 }
   0x2   :  { %10 = vsyncpa [#allocation4], 0  ;;  %s1245_s12 = smov [#allocation2]  }
   0x3   :  { %s18_s13 = sshll.u32 %s1245_s12, 4  ;;  %s19_s13 = int_to_ptr.vmem [resolvable:$true] %s18_s13 }
   0x4   :  { %s1187_s14 = scalar_lea.vmem %s19_s13, 2048  ;;  %p1192_p1 = scmp.lt.s32.totalorder %s19_s13, %s19_s13 }
   0x5   :  { %p1188_p0 = scmp.ne.s32.totalorder %s19_s13, %s1187_s14  ;;  %p1193_p2 = scmp.lt.s32.totalorder %s1187_s14, %s1187_s14 }
   0x7   :  { %p1194_p3 = por %p1193_p2, %p1192_p1 }
   0x9   :  { %p1195_p4 = pnand %p1194_p3, %p1188_p0 }
   0xb   :  { %1198 = shalt.err (!%p1195_p4)
}
   0xc   :  { %s1246_s15 = smov 128   ;;  %s1247_s16 = smov 8  }
   0xd   :  { %24 = dma.hbm_to_vmem [thread:$0]  %s1572_s1, 2048, %s19_s13, [#allocation3], %s1246_s15, %s1246_s15, %s1247_s16  }
   0xe   :  { %s1248_s19 = smov [#allocation5]  }
   0xf   :  { %s30_s20 = sshll.u32 %s1248_s19, 4  ;;  %s31_s20 = int_to_ptr.vmem [resolvable:$true] %s30_s20 }
  0x10   :  { %s1207_s21 = scalar_lea.vmem %s31_s20, 2048  ;;  %p1212_p6 = scmp.lt.s32.totalorder %s31_s20, %s31_s20 }
  0x11   :  { %p1208_p5 = scmp.ne.s32.totalorder %s31_s20, %s1207_s21  ;;  %p1213_p7 = scmp.lt.s32.totalorder %s1207_s21, %s1207_s21 }
  0x13   :  { %p1214_p8 = por %p1213_p7, %p1212_p6 }
  0x15   :  { %p1215_p9 = pnand %p1214_p8, %p1208_p5 }
  0x17   :  { %1218 = shalt.err (!%p1215_p9)
}
  0x18   :  { %36 = dma.hbm_to_vmem [thread:$0]  %s1573_s2, 2048, %s31_s20, [#allocation6], %s1246_s15, %s1246_s15, %s1247_s16  }
  0x19   :  { %1239 = dma.done.wait [#allocation3], 2048  }
  0x1a   :  { %1240 = vsyncadd [#allocation3], 4294965248 }
  0x1b   :  { %1241 = dma.done.wait [#allocation6], 2048  }
  0x1c   :  { %1242 = vsyncadd [#allocation6], 4294965248  ;;  %v1249_v0 = vmov 0   ;;  %v43_v1 = vld [vmem:[%s1571_s0] sm:$0xff]  ;;  %v60_v2 = vld [vmem:[#allocation2 + $0x78] sm:$0xff]  ;;  %v1250_v6 = vmov 0.0   ;;  %v77_v27 = vlaneseq }
  0x1d   :  { %1158 = vset.pattern.permute.xlu0 %v1249_v0  ;;  %869 = vmatprep.subr.mxu0 %v60_v2  ;;  %v59_v3 = vld [vmem:[#allocation2 + $0x70] sm:$0xff]  ;;  %v44_v4 = vld [vmem:[%s1571_s0 + $0x8] sm:$0xff]  ;;  %v57_v7 = vld [vmem:[#allocation2 + $0x60] sm:$0xff]  ;;  %v1251_v30 = vmov 1.0   ;;  %vm1252_vm2 = vmmov 0   ;;  %s1253_s0 = smov [#allocation7]  }
  0x1e   :  { %80 = vperm.xlu0 %1158, %v43_v1   ;;  %870 = vmatpush3.msra.mxu0 %v60_v2  ;;  %v58_v5 = vld [vmem:[#allocation2 + $0x68] sm:$0xff]  ;;  %v56_v8 = vld [vmem:[#allocation2 + $0x58] sm:$0xff]  ;;  %v1289_v10 = vld [vmem:[#allocation5 + $0x70] sm:$0xff]  ;;  %v78_v28 = vand.u32 127, %v77_v27  ;;  %s717_s2 = sshll.u32 %s1253_s0, 4  ;;  %s718_s2 = int_to_ptr.vmem [resolvable:$true] %s717_s2 }
  0x1f   :  { %871 = vmatprep.subr.mxu0 %v59_v3  ;;  %904 = vmatprep.subr.mxu1 %v1250_v6  ;;  %v1287_v9 = vld [vmem:[#allocation5 + $0x78] sm:$0xff]  ;;  %v55_v11 = vld [vmem:[#allocation2 + $0x50] sm:$0xff]  ;;  %v1293_v12 = vld [vmem:[#allocation5 + $0x68] sm:$0xff]  ;;  %s1219_s27 = scalar_lea.vmem %s718_s2, 32  ;;  %p1224_p11 = scmp.lt.s32.totalorder %s718_s2, %s718_s2 }
  0x20   :  { %872 = vmatpush3.msra.mxu0 %v59_v3  ;;  %905 = vmatpush3.msra.mxu1 %v1287_v9  ;;  %v54_v13 = vld [vmem:[#allocation2 + $0x48] sm:$0xff]  ;;  %v1297_v14 = vld [vmem:[#allocation5 + $0x60] sm:$0xff]  ;;  %v1301_v16 = vld [vmem:[#allocation5 + $0x58] sm:$0xff]  ;;  %p1220_p10 = scmp.ne.s32.totalorder %s718_s2, %s1219_s27  ;;  %p1225_p12 = scmp.lt.s32.totalorder %s1219_s27, %s1219_s27 }
  0x21   :  { %873 = vmatprep.subr.mxu0 %v58_v5  ;;  %906 = vmatprep.subr.mxu1 %v1250_v6  ;;  %v53_v15 = vld [vmem:[#allocation2 + $0x40] sm:$0xff]  ;;  %v52_v17 = vld [vmem:[#allocation2 + $0x38] sm:$0xff]  ;;  %v1305_v18 = vld [vmem:[#allocation5 + $0x50] sm:$0xff] }
  0x22   :  { %83 = vperm.xlu0 %1158, %v44_v4   ;;  %874 = vmatpush3.msra.mxu0 %v58_v5  ;;  %v51_v19 = vld [vmem:[#allocation2 + $0x30] sm:$0xff]  ;;  %v1309_v20 = vld [vmem:[#allocation5 + $0x48] sm:$0xff]  ;;  %v49_v22 = vld [vmem:[#allocation2 + $0x20] sm:$0xff]  ;;  %p1226_p13 = por %p1225_p12, %p1224_p11 }
  0x23   :  { %875 = vmatprep.subr.mxu0 %v57_v7  ;;  %907 = vmatpush3.msra.mxu1 %v1289_v10  ;;  %v50_v21 = vld [vmem:[#allocation2 + $0x28] sm:$0xff]  ;;  %v48_v23 = vld [vmem:[#allocation2 + $0x18] sm:$0xff]  ;;  %v47_v24 = vld [vmem:[#allocation2 + $0x10] sm:$0xff] }
  0x24   :  { %876 = vmatpush3.msra.mxu0 %v57_v7  ;;  %908 = vmatprep.subr.mxu1 %v1250_v6  ;;  %v46_v25 = vld [vmem:[#allocation2 + $0x8] sm:$0xff]  ;;  %v45_v26 = vld [vmem:[#allocation2] sm:$0xff]  ;;  %v1335_v33 = vld [vmem:[#allocation5 + $0x38] sm:$0xff]  ;;  %p1227_p0 = pnand %p1226_p13, %p1220_p10 }
  0x25   :  { %877 = vmatprep.subr.mxu0 %v56_v8  ;;  %909 = vmatpush3.msra.mxu1 %v1293_v12  ;;  %v1330_v32 = vld [vmem:[#allocation5 + $0x40] sm:$0xff]  ;;  %v1341_v34 = vld [vmem:[#allocation5 + $0x30] sm:$0xff]  ;;  %v1343_v35 = vld [vmem:[#allocation5 + $0x28] sm:$0xff] }
  0x26   :  { %878 = vmatpush3.msra.mxu0 %v56_v8  ;;  %910 = vmatprep.subr.mxu1 %v1250_v6  ;;  %v1350_v36 = vld [vmem:[#allocation5 + $0x20] sm:$0xff]  ;;  %v1356_v37 = vld [vmem:[#allocation5 + $0x18] sm:$0xff]  ;;  %v1362_v38 = vld [vmem:[#allocation5 + $0x10] sm:$0xff] }
  0x27   :  { %879 = vmatprep.subr.mxu0 %v55_v11  ;;  %911 = vmatpush3.msra.mxu1 %v1297_v14  ;;  %v1368_v39 = vld [vmem:[#allocation5 + $0x8] sm:$0xff]  ;;  %v1374_v40 = vld [vmem:[#allocation5] sm:$0xff] }
  0x28   :  { %880 = vmatpush3.msra.mxu0 %v55_v11  ;;  %912 = vmatprep.subr.mxu1 %v1250_v6 }
  0x29   :  { %881 = vmatprep.subr.mxu0 %v54_v13  ;;  %913 = vmatpush3.msra.mxu1 %v1301_v16 }
  0x2a   :  { %882 = vmatpush3.msra.mxu0 %v54_v13  ;;  %914 = vmatprep.subr.mxu1 %v1250_v6 }
  0x2b   :  { %883 = vmatprep.subr.mxu0 %v53_v15  ;;  %915 = vmatpush3.msra.mxu1 %v1305_v18 }
  0x2c   :  { %884 = vmatpush3.msra.mxu0 %v53_v15  ;;  %916 = vmatprep.subr.mxu1 %v1250_v6 }
  0x2d   :  { %885 = vmatprep.subr.mxu0 %v52_v17  ;;  %917 = vmatpush3.msra.mxu1 %v1309_v20 }
  0x2e   :  { %886 = vmatpush3.msra.mxu0 %v52_v17  ;;  %918 = vmatprep.subr.mxu1 %v1250_v6 }
  0x2f   :  { %887 = vmatprep.subr.mxu0 %v51_v19  ;;  %919 = vmatpush3.msra.mxu1 %v1330_v32 }
  0x30   :  { %888 = vmatpush3.msra.mxu0 %v51_v19  ;;  %920 = vmatprep.subr.mxu1 %v1250_v6 }
  0x31   :  { %889 = vmatprep.subr.mxu0 %v50_v21  ;;  %921 = vmatpush3.msra.mxu1 %v1335_v33 }
  0x32   :  { %890 = vmatpush3.msra.mxu0 %v50_v21  ;;  %922 = vmatprep.subr.mxu1 %v1250_v6 }
  0x33   :  { %891 = vmatprep.subr.mxu0 %v49_v22  ;;  %923 = vmatpush3.msra.mxu1 %v1341_v34 }
  0x34   :  { %892 = vmatpush3.msra.mxu0 %v49_v22  ;;  %936 = vmatprep.mubr.msk.f32.mxu1 %vm1252_vm2, %v1250_v6 }
  0x35   :  { %893 = vmatprep.subr.mxu0 %v48_v23  ;;  %924 = vmatprep.subr.mxu1 %v1250_v6 }
  0x36   :  { %894 = vmatpush3.msra.mxu0 %v48_v23  ;;  %925 = vmatpush3.msra.mxu1 %v1343_v35 }
  0x37   :  { %895 = vmatprep.subr.mxu0 %v47_v24  ;;  %926 = vmatprep.subr.mxu1 %v1250_v6 }
  0x38   :  { %896 = vmatpush3.msra.mxu0 %v47_v24  ;;  %927 = vmatpush3.msra.mxu1 %v1350_v36 }
  0x39   :  { %897 = vmatprep.subr.mxu0 %v46_v25  ;;  %928 = vmatprep.subr.mxu1 %v1250_v6 }
  0x3a   :  { %898 = vmatpush3.msra.mxu0 %v46_v25  ;;  %929 = vmatpush3.msra.mxu1 %v1356_v37 }
  0x3b   :  { %899 = vmatprep.subr.mxu0 %v45_v26  ;;  %930 = vmatprep.subr.mxu1 %v1250_v6 }
  0x3c   :  { %900 = vmatpush3.msra.mxu0 %v45_v26  ;;  %931 = vmatpush3.msra.mxu1 %v1362_v38 }
  0x3d   :  { %939 = vmatprep.subr.mxu0 %v1250_v6  ;;  %932 = vmatprep.subr.mxu1 %v1250_v6 }
  0x3e   :  { %933 = vmatpush3.msra.mxu1 %v1368_v39 }
  0x3f   :  { %934 = vmatprep.subr.mxu1 %v1250_v6 }
  0x40   :  { %935 = vmatpush3.msra.mxu1 %v1374_v40 }
  0x41   :  { %974 = vmatprep.subr.mxu1 %v1250_v6 }
  0x99   :  { %v81_v29 = vpop.permute.xlu0 %80 }
  0x9a   :  { %vm85_vm0 = vcmp.eq.s32.totalorder %v81_v29, %v78_v28 }
  0x9b   :  { %901 = vmatprep.mubr.msk.f32.mxu0 %vm85_vm0, %v1251_v30 }
  0x9d   :  { %v84_v31 = vpop.permute.xlu0 %83 }
  0x9e   :  { %vm86_vm1 = vcmp.eq.s32.totalorder %v84_v31, %v78_v28 }
  0x9f   :  { %902 = vmatmul.mubr.msk.f32.vlgmr.msra.gmra.mxu0 %vm86_vm1, %v1251_v30 }
  0xa0   :  { %940 = vmatpush3.msra.mxu0 %v1287_v9  ;;  %971 = vmatprep.mubr.msk.f32.mxu0 %vm1252_vm2, %v1250_v6 }
  0xa1   :  { %941 = vmatprep.subr.mxu0 %v1250_v6 }
  0xa2   :  { %942 = vmatpush3.msra.mxu0 %v1289_v10 }
  0xa3   :  { %943 = vmatprep.subr.mxu0 %v1250_v6 }
  0xa4   :  { %944 = vmatpush3.msra.mxu0 %v1293_v12 }
  0xa5   :  { %945 = vmatprep.subr.mxu0 %v1250_v6 }
  0xa6   :  { %946 = vmatpush3.msra.mxu0 %v1297_v14 }
  0xa7   :  { %947 = vmatprep.subr.mxu0 %v1250_v6 }
  0xa8   :  { %948 = vmatpush3.msra.mxu0 %v1301_v16 }
  0xa9   :  { %949 = vmatprep.subr.mxu0 %v1250_v6 }
  0xaa   :  { %950 = vmatpush3.msra.mxu0 %v1305_v18 }
  0xab   :  { %951 = vmatprep.subr.mxu0 %v1250_v6 }
  0xac   :  { %952 = vmatpush3.msra.mxu0 %v1309_v20 }
  0xad   :  { %953 = vmatprep.subr.mxu0 %v1250_v6 }
  0xae   :  { %954 = vmatpush3.msra.mxu0 %v1330_v32 }
  0xaf   :  { %955 = vmatprep.subr.mxu0 %v1250_v6 }
  0xb0   :  { %956 = vmatpush3.msra.mxu0 %v1335_v33 }
  0xb1   :  { %957 = vmatprep.subr.mxu0 %v1250_v6 }
  0xb2   :  { %958 = vmatpush3.msra.mxu0 %v1341_v34 }
  0xb3   :  { %959 = vmatprep.subr.mxu0 %v1250_v6 }
  0xb4   :  { %960 = vmatpush3.msra.mxu0 %v1343_v35 }
  0xb5   :  { %961 = vmatprep.subr.mxu0 %v1250_v6 }
  0xb6   :  { %962 = vmatpush3.msra.mxu0 %v1350_v36 }
  0xb7   :  { %963 = vmatprep.subr.mxu0 %v1250_v6 }
  0xb8   :  { %964 = vmatpush3.msra.mxu0 %v1356_v37 }
  0xb9   :  { %965 = vmatprep.subr.mxu0 %v1250_v6 }
  0xba   :  { %966 = vmatpush3.msra.mxu0 %v1362_v38 }
  0xbb   :  { %967 = vmatprep.subr.mxu0 %v1250_v6 }
  0xbc   :  { %968 = vmatpush3.msra.mxu0 %v1368_v39 }
  0xbd   :  { %969 = vmatprep.subr.mxu0 %v1250_v6 }
  0xbe   :  { %970 = vmatpush3.msra.mxu0 %v1374_v40 }
  0xbf   :  { %1009 = vmatprep.subr.mxu0 %v1250_v6 }
 0x15f   :  { %v1388_v41 = vpop.f32.mrf.mxu0 }
 0x161   :  { %v1390_v42 = vpop.f32.mrf.mxu0 }
 0x162   :  { %1159 = vtanh.f32 %v1390_v42 }
 0x16f   :  { %v1160_v43 = vpop.eup %1159 }
 0x170   :  { %937 = vmatmul.mubr.f32.vlgmr.msra.gmra.mxu1 %v1160_v43 }
 0x171   :  { %975 = vmatpush3.msra.mxu1 %v1287_v9  ;;  %1006 = vmatprep.mubr.msk.f32.mxu1 %vm1252_vm2, %v1250_v6 }
 0x172   :  { %976 = vmatprep.subr.mxu1 %v1250_v6 }
 0x173   :  { %977 = vmatpush3.msra.mxu1 %v1289_v10 }
 0x174   :  { %978 = vmatprep.subr.mxu1 %v1250_v6 }
 0x175   :  { %979 = vmatpush3.msra.mxu1 %v1293_v12 }
 0x176   :  { %980 = vmatprep.subr.mxu1 %v1250_v6 }
 0x177   :  { %981 = vmatpush3.msra.mxu1 %v1297_v14 }
 0x178   :  { %982 = vmatprep.subr.mxu1 %v1250_v6 }
 0x179   :  { %983 = vmatpush3.msra.mxu1 %v1301_v16 }
 0x17a   :  { %984 = vmatprep.subr.mxu1 %v1250_v6 }
 0x17b   :  { %985 = vmatpush3.msra.mxu1 %v1305_v18 }
 0x17c   :  { %986 = vmatprep.subr.mxu1 %v1250_v6 }
 0x17d   :  { %987 = vmatpush3.msra.mxu1 %v1309_v20 }
 0x17e   :  { %988 = vmatprep.subr.mxu1 %v1250_v6 }
 0x17f   :  { %989 = vmatpush3.msra.mxu1 %v1330_v32 }
 0x180   :  { %990 = vmatprep.subr.mxu1 %v1250_v6 }
 0x181   :  { %991 = vmatpush3.msra.mxu1 %v1335_v33 }
 0x182   :  { %992 = vmatprep.subr.mxu1 %v1250_v6 }
 0x183   :  { %993 = vmatpush3.msra.mxu1 %v1341_v34 }
 0x184   :  { %994 = vmatprep.subr.mxu1 %v1250_v6 }
 0x185   :  { %995 = vmatpush3.msra.mxu1 %v1343_v35 }
 0x186   :  { %996 = vmatprep.subr.mxu1 %v1250_v6 }
 0x187   :  { %997 = vmatpush3.msra.mxu1 %v1350_v36 }
 0x188   :  { %998 = vmatprep.subr.mxu1 %v1250_v6 }
 0x189   :  { %999 = vmatpush3.msra.mxu1 %v1356_v37 }
 0x18a   :  { %1000 = vmatprep.subr.mxu1 %v1250_v6 }
 0x18b   :  { %1001 = vmatpush3.msra.mxu1 %v1362_v38 }
 0x18c   :  { %1002 = vmatprep.subr.mxu1 %v1250_v6 }
 0x18d   :  { %1003 = vmatpush3.msra.mxu1 %v1368_v39 }
 0x18e   :  { %1004 = vmatprep.subr.mxu1 %v1250_v6 }
 0x18f   :  { %1005 = vmatpush3.msra.mxu1 %v1374_v40 }
 0x190   :  { %1044 = vmatprep.subr.mxu1 %v1250_v6 }
 0x230   :  { %v233_v44 = vpop.f32.mrf.mxu1 }
 0x231   :  { %v238_v45 = vrot.slane %v233_v44, 6 }
 0x232   :  { %v938_v46 = vpop.f32.mrf.mxu1 }
 0x233   :  { %v240_v47 = vadd.f32 %v238_v45, %v1390_v42 }
 0x235   :  { %1161 = vtanh.f32 %v240_v47 }
 0x242   :  { %v1162_v48 = vpop.eup %1161 }
 0x243   :  { %v243_v49 = vrot.slane %v1162_v48, 2 }
 0x245   :  { %972 = vmatmul.mubr.f32.vlgmr.msra.gmra.mxu0 %v243_v49 }
 0x246   :  { %1010 = vmatpush3.msra.mxu0 %v1287_v9  ;;  %1041 = vmatprep.mubr.msk.f32.mxu0 %vm1252_vm2, %v1250_v6 }
 0x247   :  { %1011 = vmatprep.subr.mxu0 %v1250_v6 }
 0x248   :  { %1012 = vmatpush3.msra.mxu0 %v1289_v10 }
 0x249   :  { %1013 = vmatprep.subr.mxu0 %v1250_v6 }
 0x24a   :  { %1014 = vmatpush3.msra.mxu0 %v1293_v12 }
 0x24b   :  { %1015 = vmatprep.subr.mxu0 %v1250_v6 }
 0x24c   :  { %1016 = vmatpush3.msra.mxu0 %v1297_v14 }
 0x24d   :  { %1017 = vmatprep.subr.mxu0 %v1250_v6 }
 0x24e   :  { %1018 = vmatpush3.msra.mxu0 %v1301_v16 }
 0x24f   :  { %1019 = vmatprep.subr.mxu0 %v1250_v6 }
 0x250   :  { %1020 = vmatpush3.msra.mxu0 %v1305_v18 }
 0x251   :  { %1021 = vmatprep.subr.mxu0 %v1250_v6 }
 0x252   :  { %1022 = vmatpush3.msra.mxu0 %v1309_v20 }
 0x253   :  { %1023 = vmatprep.subr.mxu0 %v1250_v6 }
 0x254   :  { %1024 = vmatpush3.msra.mxu0 %v1330_v32 }
 0x255   :  { %1025 = vmatprep.subr.mxu0 %v1250_v6 }
 0x256   :  { %1026 = vmatpush3.msra.mxu0 %v1335_v33 }
 0x257   :  { %1027 = vmatprep.subr.mxu0 %v1250_v6 }
 0x258   :  { %1028 = vmatpush3.msra.mxu0 %v1341_v34 }
 0x259   :  { %1029 = vmatprep.subr.mxu0 %v1250_v6 }
 0x25a   :  { %1030 = vmatpush3.msra.mxu0 %v1343_v35 }
 0x25b   :  { %1031 = vmatprep.subr.mxu0 %v1250_v6 }
 0x25c   :  { %1032 = vmatpush3.msra.mxu0 %v1350_v36 }
 0x25d   :  { %1033 = vmatprep.subr.mxu0 %v1250_v6 }
 0x25e   :  { %1034 = vmatpush3.msra.mxu0 %v1356_v37 }
 0x25f   :  { %1035 = vmatprep.subr.mxu0 %v1250_v6 }
 0x260   :  { %1036 = vmatpush3.msra.mxu0 %v1362_v38 }
 0x261   :  { %1037 = vmatprep.subr.mxu0 %v1250_v6 }
 0x262   :  { %1038 = vmatpush3.msra.mxu0 %v1368_v39 }
 0x263   :  { %1039 = vmatprep.subr.mxu0 %v1250_v6 }
 0x264   :  { %1040 = vmatpush3.msra.mxu0 %v1374_v40 }
 0x265   :  { %1079 = vmatprep.subr.mxu0 %v1250_v6 }
 0x305   :  { %v311_v50 = vpop.f32.mrf.mxu0 }
 0x306   :  { %v316_v51 = vrot.slane %v311_v50, 4 }
 0x307   :  { %v973_v52 = vpop.f32.mrf.mxu0 }
 0x308   :  { %v318_v53 = vadd.f32 %v316_v51, %v1390_v42 }
 0x30a   :  { %1163 = vtanh.f32 %v318_v53 }
 0x317   :  { %v1164_v54 = vpop.eup %1163 }
 0x318   :  { %v321_v55 = vrot.slane %v1164_v54, 4 }
 0x31a   :  { %1007 = vmatmul.mubr.f32.vlgmr.msra.gmra.mxu1 %v321_v55 }
 0x31b   :  { %1045 = vmatpush3.msra.mxu1 %v1287_v9  ;;  %1076 = vmatprep.mubr.msk.f32.mxu1 %vm1252_vm2, %v1250_v6 }
 0x31c   :  { %1046 = vmatprep.subr.mxu1 %v1250_v6 }
 0x31d   :  { %1047 = vmatpush3.msra.mxu1 %v1289_v10 }
 0x31e   :  { %1048 = vmatprep.subr.mxu1 %v1250_v6 }
 0x31f   :  { %1049 = vmatpush3.msra.mxu1 %v1293_v12 }
 0x320   :  { %1050 = vmatprep.subr.mxu1 %v1250_v6 }
 0x321   :  { %1051 = vmatpush3.msra.mxu1 %v1297_v14 }
 0x322   :  { %1052 = vmatprep.subr.mxu1 %v1250_v6 }
 0x323   :  { %1053 = vmatpush3.msra.mxu1 %v1301_v16 }
 0x324   :  { %1054 = vmatprep.subr.mxu1 %v1250_v6 }
 0x325   :  { %1055 = vmatpush3.msra.mxu1 %v1305_v18 }
 0x326   :  { %1056 = vmatprep.subr.mxu1 %v1250_v6 }
 0x327   :  { %1057 = vmatpush3.msra.mxu1 %v1309_v20 }
 0x328   :  { %1058 = vmatprep.subr.mxu1 %v1250_v6 }
 0x329   :  { %1059 = vmatpush3.msra.mxu1 %v1330_v32 }
 0x32a   :  { %1060 = vmatprep.subr.mxu1 %v1250_v6 }
 0x32b   :  { %1061 = vmatpush3.msra.mxu1 %v1335_v33 }
 0x32c   :  { %1062 = vmatprep.subr.mxu1 %v1250_v6 }
 0x32d   :  { %1063 = vmatpush3.msra.mxu1 %v1341_v34 }
 0x32e   :  { %1064 = vmatprep.subr.mxu1 %v1250_v6 }
 0x32f   :  { %1065 = vmatpush3.msra.mxu1 %v1343_v35 }
 0x330   :  { %1066 = vmatprep.subr.mxu1 %v1250_v6 }
 0x331   :  { %1067 = vmatpush3.msra.mxu1 %v1350_v36 }
 0x332   :  { %1068 = vmatprep.subr.mxu1 %v1250_v6 }
 0x333   :  { %1069 = vmatpush3.msra.mxu1 %v1356_v37 }
 0x334   :  { %1070 = vmatprep.subr.mxu1 %v1250_v6 }
 0x335   :  { %1071 = vmatpush3.msra.mxu1 %v1362_v38 }
 0x336   :  { %1072 = vmatprep.subr.mxu1 %v1250_v6 }
 0x337   :  { %1073 = vmatpush3.msra.mxu1 %v1368_v39 }
 0x338   :  { %1074 = vmatprep.subr.mxu1 %v1250_v6 }
 0x339   :  { %1075 = vmatpush3.msra.mxu1 %v1374_v40 }
 0x33a   :  { %1114 = vmatprep.subr.mxu1 %v1250_v6 }
 0x3da   :  { %v389_v56 = vpop.f32.mrf.mxu1 }
 0x3db   :  { %v394_v57 = vrot.slane %v389_v56, 2 }
 0x3dc   :  { %v1008_v58 = vpop.f32.mrf.mxu1 }
 0x3dd   :  { %v396_v59 = vadd.f32 %v394_v57, %v1390_v42 }
 0x3df   :  { %1165 = vtanh.f32 %v396_v59 }
 0x3ec   :  { %v1166_v60 = vpop.eup %1165 }
 0x3ed   :  { %v399_v61 = vrot.slane %v1166_v60, 6 }
 0x3ef   :  { %1042 = vmatmul.mubr.f32.vlgmr.msra.gmra.mxu0 %v399_v61 }
 0x3f0   :  { %1080 = vmatpush3.msra.mxu0 %v1287_v9  ;;  %1111 = vmatprep.mubr.msk.f32.mxu0 %vm1252_vm2, %v1250_v6 }
 0x3f1   :  { %1081 = vmatprep.subr.mxu0 %v1250_v6 }
 0x3f2   :  { %1082 = vmatpush3.msra.mxu0 %v1289_v10 }
 0x3f3   :  { %1083 = vmatprep.subr.mxu0 %v1250_v6 }
 0x3f4   :  { %1084 = vmatpush3.msra.mxu0 %v1293_v12 }
 0x3f5   :  { %1085 = vmatprep.subr.mxu0 %v1250_v6 }
 0x3f6   :  { %1086 = vmatpush3.msra.mxu0 %v1297_v14 }
 0x3f7   :  { %1087 = vmatprep.subr.mxu0 %v1250_v6 }
 0x3f8   :  { %1088 = vmatpush3.msra.mxu0 %v1301_v16 }
 0x3f9   :  { %1089 = vmatprep.subr.mxu0 %v1250_v6 }
 0x3fa   :  { %1090 = vmatpush3.msra.mxu0 %v1305_v18 }
 0x3fb   :  { %1091 = vmatprep.subr.mxu0 %v1250_v6 }
 0x3fc   :  { %1092 = vmatpush3.msra.mxu0 %v1309_v20 }
 0x3fd   :  { %1093 = vmatprep.subr.mxu0 %v1250_v6 }
 0x3fe   :  { %1094 = vmatpush3.msra.mxu0 %v1330_v32 }
 0x3ff   :  { %1095 = vmatprep.subr.mxu0 %v1250_v6 }
 0x400   :  { %1096 = vmatpush3.msra.mxu0 %v1335_v33 }
 0x401   :  { %1097 = vmatprep.subr.mxu0 %v1250_v6 }
 0x402   :  { %1098 = vmatpush3.msra.mxu0 %v1341_v34 }
 0x403   :  { %1099 = vmatprep.subr.mxu0 %v1250_v6 }
 0x404   :  { %1100 = vmatpush3.msra.mxu0 %v1343_v35 }
 0x405   :  { %1101 = vmatprep.subr.mxu0 %v1250_v6 }
 0x406   :  { %1102 = vmatpush3.msra.mxu0 %v1350_v36 }
 0x407   :  { %1103 = vmatprep.subr.mxu0 %v1250_v6 }
 0x408   :  { %1104 = vmatpush3.msra.mxu0 %v1356_v37 }
 0x409   :  { %1105 = vmatprep.subr.mxu0 %v1250_v6 }
 0x40a   :  { %1106 = vmatpush3.msra.mxu0 %v1362_v38 }
 0x40b   :  { %1107 = vmatprep.subr.mxu0 %v1250_v6 }
 0x40c   :  { %1108 = vmatpush3.msra.mxu0 %v1368_v39 }
 0x40d   :  { %1109 = vmatprep.subr.mxu0 %v1250_v6 }
 0x40e   :  { %1110 = vmatpush3.msra.mxu0 %v1374_v40 }
 0x4af   :  { %v467_v62 = vpop.f32.mrf.mxu0 }
 0x4b0   :  { %v471_v63 = vadd.f32 %v1388_v41, %v467_v62 }
 0x4b1   :  { %v1043_v0 = vpop.f32.mrf.mxu0 }
 0x4b2   :  { %1167 = vtanh.f32 %v471_v63 }
 0x4bf   :  { %v1168_v1 = vpop.eup %1167 }
 0x4c0   :  { %1077 = vmatmul.mubr.f32.vlgmr.msra.gmra.mxu1 %v1168_v1 }
 0x4c1   :  { %1115 = vmatpush3.msra.mxu1 %v1287_v9  ;;  %1146 = vmatprep.mubr.msk.f32.mxu1 %vm1252_vm2, %v1250_v6 }
 0x4c2   :  { %1116 = vmatprep.subr.mxu1 %v1250_v6 }
 0x4c3   :  { %1117 = vmatpush3.msra.mxu1 %v1289_v10 }
 0x4c4   :  { %1118 = vmatprep.subr.mxu1 %v1250_v6 }
 0x4c5   :  { %1119 = vmatpush3.msra.mxu1 %v1293_v12 }
 0x4c6   :  { %1120 = vmatprep.subr.mxu1 %v1250_v6 }
 0x4c7   :  { %1121 = vmatpush3.msra.mxu1 %v1297_v14 }
 0x4c8   :  { %1122 = vmatprep.subr.mxu1 %v1250_v6 }
 0x4c9   :  { %1123 = vmatpush3.msra.mxu1 %v1301_v16 }
 0x4ca   :  { %1124 = vmatprep.subr.mxu1 %v1250_v6 }
 0x4cb   :  { %1125 = vmatpush3.msra.mxu1 %v1305_v18 }
 0x4cc   :  { %1126 = vmatprep.subr.mxu1 %v1250_v6 }
 0x4cd   :  { %1127 = vmatpush3.msra.mxu1 %v1309_v20 }
 0x4ce   :  { %1128 = vmatprep.subr.mxu1 %v1250_v6 }
 0x4cf   :  { %1129 = vmatpush3.msra.mxu1 %v1330_v32 }
 0x4d0   :  { %1130 = vmatprep.subr.mxu1 %v1250_v6 }
 0x4d1   :  { %1131 = vmatpush3.msra.mxu1 %v1335_v33 }
 0x4d2   :  { %1132 = vmatprep.subr.mxu1 %v1250_v6 }
 0x4d3   :  { %1133 = vmatpush3.msra.mxu1 %v1341_v34 }
 0x4d4   :  { %1134 = vmatprep.subr.mxu1 %v1250_v6 }
 0x4d5   :  { %1135 = vmatpush3.msra.mxu1 %v1343_v35 }
 0x4d6   :  { %1136 = vmatprep.subr.mxu1 %v1250_v6 }
 0x4d7   :  { %1137 = vmatpush3.msra.mxu1 %v1350_v36 }
 0x4d8   :  { %1138 = vmatprep.subr.mxu1 %v1250_v6 }
 0x4d9   :  { %1139 = vmatpush3.msra.mxu1 %v1356_v37 }
 0x4da   :  { %1140 = vmatprep.subr.mxu1 %v1250_v6 }
 0x4db   :  { %1141 = vmatpush3.msra.mxu1 %v1362_v38 }
 0x4dc   :  { %1142 = vmatprep.subr.mxu1 %v1250_v6 }
 0x4dd   :  { %1143 = vmatpush3.msra.mxu1 %v1368_v39 }
 0x4de   :  { %1144 = vmatprep.subr.mxu1 %v1250_v6 }
 0x4df   :  { %1145 = vmatpush3.msra.mxu1 %v1374_v40 }
 0x580   :  { %v539_v2 = vpop.f32.mrf.mxu1 }
 0x581   :  { %v544_v3 = vrot.slane %v539_v2, 6 }
 0x582   :  { %v1078_v4 = vpop.f32.mrf.mxu1 }
 0x583   :  { %v546_v5 = vadd.f32 %v1388_v41, %v544_v3 }
 0x585   :  { %1169 = vtanh.f32 %v546_v5 }
 0x592   :  { %v1170_v7 = vpop.eup %1169 }
 0x593   :  { %v549_v8 = vrot.slane %v1170_v7, 2 }
 0x595   :  { %1112 = vmatmul.mubr.f32.vlgmr.msra.gmra.mxu0 %v549_v8 }
 0x655   :  { %v617_v9 = vpop.f32.mrf.mxu0 }
 0x656   :  { %v622_v10 = vrot.slane %v617_v9, 4 }
 0x657   :  { %v1113_v11 = vpop.f32.mrf.mxu0 }
 0x658   :  { %v624_v12 = vadd.f32 %v1388_v41, %v622_v10 }
 0x65a   :  { %1171 = vtanh.f32 %v624_v12 }
 0x667   :  { %v1172_v13 = vpop.eup %1171 }
 0x668   :  { %v627_v14 = vrot.slane %v1172_v13, 4 }
 0x66a   :  { %1147 = vmatmul.mubr.f32.vlgmr.msra.gmra.mxu1 %v627_v14 }
 0x72a   :  { %v695_v6 = vpop.f32.mrf.mxu1 }
 0x72b   :  { %v700_v15 = vrot.slane %v695_v6, 2 }
 0x72c   :  { %v1148_v16 = vpop.f32.mrf.mxu1 }
 0x72d   :  { %v702_v17 = vadd.f32 %v1388_v41, %v700_v15 }
 0x72f   :  { %1173 = vtanh.f32 %v702_v17 }
 0x73c   :  { %v1174_v18 = vpop.eup %1173 }
 0x73d   :  { %v731_v19 = vmul.f32 -1.442695, %v1174_v18 }
 0x73f   :  { %1175 = vpow2.f32 %v731_v19 }
 0x74c   :  { %v1176_v20 = vpop.eup %1175 }
 0x74d   :  { %v707_v21 = vadd.f32 1.0, %v1176_v20 }
 0x74f   :  { %1177 = vrcp.f32 %v707_v21 }
 0x75c   :  { %v1178_v22 = vpop.eup %1177 }
 0x75d   :  { %710 = vst [vmem:[#allocation7 - $0x6] sm:$0xc0] %v1178_v22 }
 0x75e   :  { %1230 = shalt.err (!%p1227_p0)
}
 0x75f   :  { %720 = dma.vmem_to_hbm [thread:$0]  %s718_s2, 32, %s1574_s3, [#allocation4]  }
 0x760   :  { %1243 = dma.done.wait [#allocation4], 32  }
 0x761   :  { %1244 = vsyncadd [#allocation4], 4294967264 }
 0x762   :  { %724 = vsyncpa [#allocation3], 1 }
 0x763   :  { %725 = vsyncpa [#allocation6], 1 }
 0x764   :  { %726 = vsyncpa [#allocation4], 1 }

</bundles_post_ra>
